<compile_context>
chip_gen: v6e
topology: v6e:2x2x1
jax: 0.10.0
libtpu: 0.0.40
codegen_flags: <defaults>
</compile_context>

<pallas_src>
import functools

import jax
import jax.numpy as jnp
from jax.experimental import pallas as pl
from jax.experimental.pallas import tpu as pltpu


_LANES = 128
_SUBLANES = 8


def _round_up(x: int, m: int) -> int:
    return ((x + m - 1) // m) * m


def _padded_row_bytes(width: int, itemsize: int) -> int:
    """Bytes of ONE batch-row of a (rows, width) VMEM tile (lane-padded to 128)."""
    return _round_up(max(int(width), 1), _LANES) * itemsize


def _padded_param_bytes(shape, itemsize: int) -> int:
    """Padded VMEM bytes of a small (rows, cols) parameter block."""
    rows, cols = shape
    sub = _SUBLANES if itemsize >= 4 else (32 // itemsize)   # 16-bit packs sublanes
    return _round_up(max(int(rows), 1), sub) * _round_up(max(int(cols), 1), _LANES) * itemsize


def _physical_vmem_bytes() -> int:
    """Per-core physical VMEM (128 MiB on v5e/v6e, 64 MiB on v7x)."""
    try:
        info = pltpu.get_tpu_info()
        v = getattr(info, "vmem_capacity_bytes", None)
        if v:
            return int(v)
    except Exception:
        pass
    return 64 << 20   # conservative (v7x-sized) fallback


def _make_mlp_kernel(num_hidden_layers: int, classification: bool, compute_dtype):
    """Kernel for: (Linear+ReLU) x num_hidden_layers -> Linear (+Sigmoid)."""

    def kernel(x_ref, *refs):
        # refs = (w0, b0, w1, b1, ..., w_last, b_last, out_ref)
        out_ref = refs[-1]
        params = refs[:-1]

        # Cast the input tile once; activations are carried in compute_dtype.
        h = x_ref[...].astype(compute_dtype)                 # (TM, in_features)

        # Hidden layers: Linear + ReLU (static unrolled loop over a few layers).
        for i in range(num_hidden_layers):
            w = params[2 * i][...]                           # (in, out) compute_dtype
            b = params[2 * i + 1][...]                       # (1, out) f32
            z = jnp.dot(h, w, preferred_element_type=jnp.float32) + b
            h = jnp.maximum(z, 0.0).astype(compute_dtype)

        # Output layer: Linear (+ Sigmoid for classification). Sigmoid's exp
        # runs on the EUP slot -> effectively free inside this kernel.
        w = params[2 * num_hidden_layers][...]
        b = params[2 * num_hidden_layers + 1][...]
        z = jnp.dot(h, w, preferred_element_type=jnp.float32) + b
        if classification:
            z = jax.nn.sigmoid(z)

        out_ref[...] = z.astype(out_ref.dtype)

    return kernel


def tabular_mlp_forward(x, weights, biases, task_type="regression",
                        block_rows=None, compute_dtype=jnp.bfloat16):
    """Pallas-backed TabularMLP forward.

    Args:
      x: (batch, input_features), f32 or bf16 (bf16 halves the dominant HBM read).
      weights: list of (in_dim, out_dim) arrays (transposed vs PyTorch nn.Linear).
               Pre-cast to `compute_dtype` outside jit to avoid a per-call cast.
      biases:  list of (out_dim,) arrays.
      task_type: 'regression' or 'classification'.
      block_rows: optional explicit batch tile; None -> auto (largest tile that
                  fits the generation-gated, padding-aware VMEM budget).
      compute_dtype: MXU operand dtype (bf16 default; float32 for f32-faithful).
    Returns:
      (batch, output_features) float32.
    """
    assert len(weights) == len(biases) and len(weights) >= 1
    num_hidden = len(weights) - 1
    classification = task_type == "classification"

    batch, in_features = x.shape
    out_features = weights[-1].shape[1]
    x_itemsize = jnp.dtype(x.dtype).itemsize
    c_itemsize = jnp.dtype(compute_dtype).itemsize

    # ---- Flatten params (astype is a no-op if the caller pre-cast them). ----
    flat_params, param_specs = [], []
    const_map = lambda i: (0, 0)                      # resident across grid steps
    param_bytes = 0
    for w, b in zip(weights, biases):
        w_c = w.astype(compute_dtype)
        b_r = b.reshape(1, -1).astype(jnp.float32)
        flat_params += [w_c, b_r]
        param_specs += [pl.BlockSpec(w_c.shape, const_map),
                        pl.BlockSpec(b_r.shape, const_map)]
        param_bytes += _padded_param_bytes(w_c.shape, c_itemsize)
        param_bytes += _padded_param_bytes(b_r.shape, 4)
    param_bytes *= 2                                  # pipeline keeps 2 buffers

    # ---- Padding-aware per-batch-row VMEM footprint (lane pad to 128). ----
    widest = max([in_features, out_features] + [w.shape[1] for w in weights])
    per_row = 0
    per_row += 2 * _padded_row_bytes(in_features, x_itemsize)   # x tile, 2 bufs
    per_row += 2 * _padded_row_bytes(out_features, 4)           # out tile, 2 bufs
    per_row += _padded_row_bytes(in_features, 4)                # x load/cast temp
    per_row += _padded_row_bytes(widest, 4)                     # f32 matmul result
    per_row += _padded_row_bytes(widest, c_itemsize)            # carried activation
    per_row += _padded_row_bytes(widest, 4)                     # fusion-temp slack

    # ---- Generation-gated VMEM budget (v7x 64 MiB vs v5e/v6e 128 MiB). ----
    phys_vmem = _physical_vmem_bytes()
    usable = int(phys_vmem * 0.85)                    # ~54 MiB v7x, ~108 MiB v5e/v6e
    fixed = param_bytes + (4 << 20)
    row_budget = max(usable - fixed, 8 << 20)

    # ---- Batch tile: biggest that fits; amortizes the ~0.35us/step overhead. ----
    if block_rows is None:
        tm = max(row_budget // per_row, _SUBLANES)
    else:
        tm = int(block_rows)
    tm = min(tm, _round_up(batch, _SUBLANES))
    # Guarantee >= 2 grid steps for large batches so v7x's two TensorCores both
    # get work; harmless (still one big tile each) on single-TC v5e/v6e.
    if batch * in_features * x_itemsize >= (4 << 20) and tm >= batch:
        tm = pl.cdiv(batch, 2)
    tm = _round_up(max(int(tm), _SUBLANES), _SUBLANES)
    grid = (pl.cdiv(batch, tm),)

    vmem_limit = int(min(max(fixed + tm * per_row + (4 << 20), 32 << 20), usable))

    x_spec = pl.BlockSpec((tm, in_features), lambda i: (i, 0))
    out_spec = pl.BlockSpec((tm, out_features), lambda i: (i, 0))

    # Advisory cost estimate for XLA scheduling around the custom call.
    flops = 2 * batch * sum(w.shape[0] * w.shape[1] for w in weights)
    transcendentals = batch * out_features if classification else 0
    raw_param_bytes = sum(int(p.size) * p.dtype.itemsize for p in flat_params)
    bytes_accessed = (x.size * x_itemsize + batch * out_features * 4
                      + raw_param_bytes)
    cost = pl.CostEstimate(flops=flops, transcendentals=transcendentals,
                           bytes_accessed=bytes_accessed)

    kernel = _make_mlp_kernel(num_hidden, classification, compute_dtype)

    out = pl.pallas_call(
        kernel,
        out_shape=jax.ShapeDtypeStruct((batch, out_features), jnp.float32),
        grid=grid,
        in_specs=[x_spec] + param_specs,
        out_specs=out_spec,
        compiler_params=pltpu.CompilerParams(
            dimension_semantics=("parallel",),
            vmem_limit_bytes=vmem_limit),
        cost_estimate=cost,
    )(x, *flat_params)
    return out


def init_tabular_mlp_params(key, input_features, output_features, layers):
    """Init mirroring nn.Linear default U(-1/sqrt(in), 1/sqrt(in)).
    Weights returned in (in_dim, out_dim) layout (transposed vs PyTorch)."""
    dims = [input_features] + list(layers) + [output_features]
    weights, biases = [], []
    for i in range(len(dims) - 1):
        in_dim, out_dim = dims[i], dims[i + 1]
        key, kw, kb = jax.random.split(key, 3)
        bound = 1.0 / (in_dim ** 0.5)
        weights.append(jax.random.uniform(kw, (in_dim, out_dim), jnp.float32,
                                          -bound, bound))
        biases.append(jax.random.uniform(kb, (out_dim,), jnp.float32,
                                         -bound, bound))
    return weights, biases


def _reference_forward(x, weights, biases, task_type,
                       compute_dtype=jnp.bfloat16, precision=None):
    """Pure-JAX reference mirroring the kernel's precision path
    (compute_dtype operands, f32 accumulation, compute_dtype-carried activations)."""
    h = x.astype(compute_dtype)
    for w, b in zip(weights[:-1], biases[:-1]):
        z = jnp.dot(h, w.astype(compute_dtype),
                    preferred_element_type=jnp.float32, precision=precision) + b
        h = jnp.maximum(z, 0.0).astype(compute_dtype)
    z = jnp.dot(h, weights[-1].astype(compute_dtype),
                preferred_element_type=jnp.float32, precision=precision) + biases[-1]
    if task_type == "classification":
        z = jax.nn.sigmoid(z)
    return z


if __name__ == "__main__":
    key = jax.random.PRNGKey(0)

    # Small, module-consistent tabular shapes.
    batch = 64
    input_features = 16
    hidden_layers = [32, 32]
    output_features = 4

    key, kx = jax.random.split(key)
    x = jax.random.normal(kx, (batch, input_features), jnp.float32)
    weights, biases = init_tabular_mlp_params(
        key, input_features, output_features, hidden_layers)

    # Pre-cast weights to bf16 ONCE outside the jitted calls (review item: no
    # recurring per-call XLA cast pass over the params).
    weights_bf16 = [w.astype(jnp.bfloat16) for w in weights]

    # 1) Classification head, bf16 compute, bf16 input features, small
    #    block_rows=16 so the batch grid has several steps.
    x_bf16 = x.astype(jnp.bfloat16)
    fwd_cls = jax.jit(functools.partial(
        tabular_mlp_forward, task_type="classification", block_rows=16,
        compute_dtype=jnp.bfloat16))
    out_cls = jax.block_until_ready(fwd_cls(x_bf16, weights_bf16, biases))
    ref_cls = _reference_forward(x_bf16, weights, biases, "classification",
                                 compute_dtype=jnp.bfloat16)
    assert out_cls.shape == (batch, output_features)
    assert jnp.allclose(out_cls, ref_cls, atol=2e-3, rtol=2e-3), \
        "classification (bf16) mismatch vs reference"

    # 2) Regression head, f32-faithful path (compute_dtype=float32), auto tile.
    fwd_reg = jax.jit(functools.partial(
        tabular_mlp_forward, task_type="regression", block_rows=None,
        compute_dtype=jnp.float32))
    out_reg = jax.block_until_ready(fwd_reg(x, weights, biases))
    ref_reg = _reference_forward(x, weights, biases, "regression",
                                 compute_dtype=jnp.float32,
                                 precision=jax.lax.Precision.HIGHEST)
    assert jnp.allclose(out_reg, ref_reg, atol=1e-3, rtol=1e-3), \
        "regression (f32) mismatch vs reference"

    # 3) Ragged last tile: batch not a multiple of the block, f32 input + bf16 compute.
    x_odd = x[:42]
    fwd_odd = jax.jit(functools.partial(
        tabular_mlp_forward, task_type="classification", block_rows=16,
        compute_dtype=jnp.bfloat16))
    out_odd = jax.block_until_ready(fwd_odd(x_odd, weights_bf16, biases))
    ref_odd = _reference_forward(x_odd, weights, biases, "classification",
                                 compute_dtype=jnp.bfloat16)
    assert out_odd.shape == (42, output_features)
    assert jnp.allclose(out_odd, ref_odd, atol=2e-3, rtol=2e-3), \
        "ragged-batch mismatch vs reference"

    print("KERNEL_OK")
</pallas_src>

<mosaic_0001>
module attributes {stable_mosaic.version = 11 : i64} {
  func.func @kernel(%arg0: i32, %arg1: memref<16x16xbf16, #tpu.memory_space<vmem>>, %arg2: memref<16x32xbf16, #tpu.memory_space<vmem>>, %arg3: memref<1x32xf32, #tpu.memory_space<vmem>>, %arg4: memref<32x32xbf16, #tpu.memory_space<vmem>>, %arg5: memref<1x32xf32, #tpu.memory_space<vmem>>, %arg6: memref<32x4xbf16, #tpu.memory_space<vmem>>, %arg7: memref<1x4xf32, #tpu.memory_space<vmem>>, %arg8: memref<16x4xf32, #tpu.memory_space<vmem>>) attributes {dimension_semantics = [#tpu.dimension_semantics<parallel>], iteration_bounds = array<i64: 4>, scalar_prefetch = 0 : i64, scratch_operands = 0 : i64, tpu.core_type = #tpu.core_type<tc>, window_params = [{transform_indices = @transform_0, window_bounds = array<i64: 16, 16>}, {pipeline_mode = #tpu.pipeline_mode<synchronous>, transform_indices = @transform_1, window_bounds = array<i64: 16, 32>}, {pipeline_mode = #tpu.pipeline_mode<synchronous>, transform_indices = @transform_2, window_bounds = array<i64: 1, 32>}, {pipeline_mode = #tpu.pipeline_mode<synchronous>, transform_indices = @transform_3, window_bounds = array<i64: 32, 32>}, {pipeline_mode = #tpu.pipeline_mode<synchronous>, transform_indices = @transform_4, window_bounds = array<i64: 1, 32>}, {pipeline_mode = #tpu.pipeline_mode<synchronous>, transform_indices = @transform_5, window_bounds = array<i64: 32, 4>}, {pipeline_mode = #tpu.pipeline_mode<synchronous>, transform_indices = @transform_6, window_bounds = array<i64: 1, 4>}, {transform_indices = @transform_7, window_bounds = array<i64: 16, 4>}]} {
    %c0 = arith.constant 0 : index
    %c0_0 = arith.constant 0 : index
    %0 = vector.load %arg1[%c0, %c0_0] : memref<16x16xbf16, #tpu.memory_space<vmem>>, vector<16x16xbf16>
    %c0_1 = arith.constant 0 : index
    %c0_2 = arith.constant 0 : index
    %1 = vector.load %arg2[%c0_1, %c0_2] : memref<16x32xbf16, #tpu.memory_space<vmem>>, vector<16x32xbf16>
    %c0_3 = arith.constant 0 : index
    %c0_4 = arith.constant 0 : index
    %2 = vector.load %arg3[%c0_3, %c0_4] : memref<1x32xf32, #tpu.memory_space<vmem>>, vector<1x32xf32>
    %cst = arith.constant dense<0.000000e+00> : vector<16x32xf32>
    %3 = tpu.matmul %0, %1, %cst {dimension_numbers = #tpu.dot_dimension_numbers<[1], [0], [0], [1], [0, 0, 1, 1], [], []>} : vector<16x16xbf16>, vector<16x32xbf16>, vector<16x32xf32> -> vector<16x32xf32>
    %4 = vector.broadcast %2 : vector<1x32xf32> to vector<16x32xf32>
    %5 = arith.addf %3, %4 : vector<16x32xf32>
    %cst_5 = arith.constant 0.000000e+00 : f32
    %6 = vector.broadcast %cst_5 : f32 to vector<16x32xf32>
    %7 = arith.maximumf %5, %6 : vector<16x32xf32>
    %8 = arith.truncf %7 : vector<16x32xf32> to vector<16x32xbf16>
    %c0_6 = arith.constant 0 : index
    %c0_7 = arith.constant 0 : index
    %9 = vector.load %arg4[%c0_6, %c0_7] : memref<32x32xbf16, #tpu.memory_space<vmem>>, vector<32x32xbf16>
    %c0_8 = arith.constant 0 : index
    %c0_9 = arith.constant 0 : index
    %10 = vector.load %arg5[%c0_8, %c0_9] : memref<1x32xf32, #tpu.memory_space<vmem>>, vector<1x32xf32>
    %cst_10 = arith.constant dense<0.000000e+00> : vector<16x32xf32>
    %11 = tpu.matmul %8, %9, %cst_10 {dimension_numbers = #tpu.dot_dimension_numbers<[1], [0], [0], [1], [0, 0, 1, 1], [], []>} : vector<16x32xbf16>, vector<32x32xbf16>, vector<16x32xf32> -> vector<16x32xf32>
    %12 = vector.broadcast %10 : vector<1x32xf32> to vector<16x32xf32>
    %13 = arith.addf %11, %12 : vector<16x32xf32>
    %cst_11 = arith.constant 0.000000e+00 : f32
    %14 = vector.broadcast %cst_11 : f32 to vector<16x32xf32>
    %15 = arith.maximumf %13, %14 : vector<16x32xf32>
    %16 = arith.truncf %15 : vector<16x32xf32> to vector<16x32xbf16>
    %c0_12 = arith.constant 0 : index
    %c0_13 = arith.constant 0 : index
    %17 = vector.load %arg6[%c0_12, %c0_13] : memref<32x4xbf16, #tpu.memory_space<vmem>>, vector<32x4xbf16>
    %c0_14 = arith.constant 0 : index
    %c0_15 = arith.constant 0 : index
    %18 = vector.load %arg7[%c0_14, %c0_15] : memref<1x4xf32, #tpu.memory_space<vmem>>, vector<1x4xf32>
    %cst_16 = arith.constant dense<0.000000e+00> : vector<16x4xf32>
    %19 = tpu.matmul %16, %17, %cst_16 {dimension_numbers = #tpu.dot_dimension_numbers<[1], [0], [0], [1], [0, 0, 1, 1], [], []>} : vector<16x32xbf16>, vector<32x4xbf16>, vector<16x4xf32> -> vector<16x4xf32>
    %20 = vector.broadcast %18 : vector<1x4xf32> to vector<16x4xf32>
    %21 = arith.addf %19, %20 : vector<16x4xf32>
    %22 = arith.negf %21 : vector<16x4xf32>
    %23 = math.exp %22 : vector<16x4xf32>
    %cst_17 = arith.constant 1.000000e+00 : f32
    %24 = vector.broadcast %cst_17 : f32 to vector<16x4xf32>
    %25 = arith.addf %24, %23 : vector<16x4xf32>
    %26 = arith.divf %24, %25 : vector<16x4xf32>
    %c0_18 = arith.constant 0 : index
    %c0_19 = arith.constant 0 : index
    %27 = vector.load %arg8[%c0_18, %c0_19] : memref<16x4xf32, #tpu.memory_space<vmem>>, vector<16x4xf32>
    tpu.vector_store %arg8[%c0_18, %c0_19], %26 {strides = array<i32>} : memref<16x4xf32, #tpu.memory_space<vmem>>, vector<16x4xf32>,
    return
  }
  func.func @transform_0(%arg0: i32) -> (i32, i32) {
    %c0_i32 = arith.constant 0 : i32
    %c0_i32_0 = arith.constant 0 : i32
    return %arg0, %c0_i32 : i32, i32
  }
  func.func @transform_1(%arg0: i32) -> (i32, i32) {
    %c0_i32 = arith.constant 0 : i32
    %c0_i32_0 = arith.constant 0 : i32
    %c0_i32_1 = arith.constant 0 : i32
    return %c0_i32, %c0_i32_0 : i32, i32
  }
  func.func @transform_2(%arg0: i32) -> (i32, i32) {
    %c0_i32 = arith.constant 0 : i32
    %c0_i32_0 = arith.constant 0 : i32
    %c0_i32_1 = arith.constant 0 : i32
    return %c0_i32, %c0_i32_0 : i32, i32
  }
  func.func @transform_3(%arg0: i32) -> (i32, i32) {
    %c0_i32 = arith.constant 0 : i32
    %c0_i32_0 = arith.constant 0 : i32
    %c0_i32_1 = arith.constant 0 : i32
    return %c0_i32, %c0_i32_0 : i32, i32
  }
  func.func @transform_4(%arg0: i32) -> (i32, i32) {
    %c0_i32 = arith.constant 0 : i32
    %c0_i32_0 = arith.constant 0 : i32
    %c0_i32_1 = arith.constant 0 : i32
    return %c0_i32, %c0_i32_0 : i32, i32
  }
  func.func @transform_5(%arg0: i32) -> (i32, i32) {
    %c0_i32 = arith.constant 0 : i32
    %c0_i32_0 = arith.constant 0 : i32
    %c0_i32_1 = arith.constant 0 : i32
    return %c0_i32, %c0_i32_0 : i32, i32
  }
  func.func @transform_6(%arg0: i32) -> (i32, i32) {
    %c0_i32 = arith.constant 0 : i32
    %c0_i32_0 = arith.constant 0 : i32
    %c0_i32_1 = arith.constant 0 : i32
    return %c0_i32, %c0_i32_0 : i32, i32
  }
  func.func @transform_7(%arg0: i32) -> (i32, i32) {
    %c0_i32 = arith.constant 0 : i32
    %c0_i32_0 = arith.constant 0 : i32
    return %arg0, %c0_i32 : i32, i32
  }
}

</mosaic_0001>

<bundles_post_ra>
// kernel: tabular_mlp_forward.1
= control target key start
LH: loop header
LB: loop body
LE: loop exit
PB: predicated region body
PF: predicated region fallthrough
CT: control target
= control target key end

     0   :  { %s691_s24 = smov 0   ;;  %s738_s0 = inlined_call_operand.vmem [shape: bf16[64,16], index: 0, kind: input, shape index: {}]   ;;  %s739_s1 = inlined_call_operand.vmem [shape: bf16[16,32], index: 1, kind: input, shape index: {}]   ;;  %s740_s2 = inlined_call_operand.vmem [shape: f32[1,32], index: 2, kind: input, shape index: {}]   ;;  %s741_s3 = inlined_call_operand.vmem [shape: bf16[32,32], index: 3, kind: input, shape index: {}]   ;;  %s742_s4 = inlined_call_operand.vmem [shape: f32[1,32], index: 4, kind: input, shape index: {}]   ;;  %s743_s5 = inlined_call_operand.vmem [shape: bf16[32,4], index: 5, kind: input, shape index: {}]   ;;  %s744_s6 = inlined_call_operand.vmem [shape: f32[1,4], index: 6, kind: input, shape index: {}]   ;;  %s745_s7 = inlined_call_operand.vmem [shape: f32[64,4], index: 7, kind: output, shape index: {}]  }
   0x1 LB: > { %s562_s25 = sadd.s32 4294967295, %s647_s24   ;;  %p566_p0 = scmp.ge.s32.totalorder %s647_s24, 1  ;;  %s647_s24 = sphi %s691_s24, %s17_s24  }
   0x2   : > { %p238_p1 = scmp.lt.s32.totalorder %s647_s24, 5 }
   0x4   : > { %p239_p2 = pnand %p566_p0, %p238_p1 }
   0x5   : > { %s567_s28 = sshll.u32 (!%p239_p2), %s562_s25, 1 }
   0x6   : > { %242 = sbr.rel (%p239_p2) target bundleno = 654 (0x28e), region = 48  ;;  %p271_p3 = scmp.lt.s32.totalorder (!%p239_p2), %s567_s28, 7 }
   0xb   : > { %v627_v0 = vld [vmem:[%s739_s1] sm:$0xff]   ;;  %v649_v1 = vmov 0.0   ;;  %vm650_vm0 = vmmov 0   ;;  %s747_s28 = smov (!%p271_p3, %s567_s28), 7  ;;  %vm305_vm1 = vcmask 130048   ;;  %v629_v3 = vld [vmem:[%s741_s3 + $0x8] sm:$0xff]  }
   0xc   : > { %595 = vmatprep.subr.bf16.mxu0 %v649_v1  ;;  %601 = vmatprep.subr.bf16.mxu1 %v649_v1  ;;  %s568_s29 = sshll.u32 %s747_s28, 2  ;;  %v630_v4 = vld [vmem:[%s741_s3] sm:$0xff]   ;;  %vm376_vm2 = vcmask 261120   ;;  %v631_v15 = vld [vmem:[%s743_s5 + $0x8] sm:$0xff]   ;;  %s570_s25 = sshll.u32 %s747_s28, 3  ;;  %vm503_vm3 = vcmask 31744  }
   0xd   : > { %596 = vmatpush3.bf16.msra.mxu0 %v627_v0  ;;  %597 = vmatprep.mubr.msk.bf16.mxu0 %vm650_vm0, %v649_v1  ;;  %s274_s9 = scalar_lea.vmem %s738_s0, %s568_s29  ;;  %v571_v5 = vld [vmem:[%s740_s2] ss:$0 sm:$0xff]  ;;  %s280_s29 = scalar_lea.vmem %s745_s7, %s570_s25 }
   0xe   : > { %605 = vmatprep.mubr.msk.bf16.mxu1 %vm650_vm0, %v649_v1  ;;  %609 = vmatprep.subr.bf16.mxu0 %v649_v1  ;;  %v628_v2 = vld [vmem:[%s274_s9] sm:$0xff]  }
   0xf   : > { %602 = vmatpush3.bf16.msra.mxu1 %v629_v3  ;;  %v632_v16 = vld [vmem:[%s743_s5] sm:$0xff]  }
  0x10   : > { %598 = vmatmul.mubr.msk.bf16.vlgmr.msra.gmra.mxu0 %vm305_vm1, %v628_v2  ;;  %603 = vmatprep.subr.bf16.mxu1 %v649_v1  ;;  %v575_v17 = vld [vmem:[%s742_s4] ss:$0 sm:$0xff] }
  0x11   : > { %613 = vmatprep.mubr.msk.bf16.mxu0 %vm650_vm0, %v649_v1  ;;  %610 = vmatpush3.bf16.msra.mxu0 %v631_v15  ;;  %v579_v27 = vld [vmem:[%s744_s6] ss:$0 sm:$0xff] }
  0x12   : > { %611 = vmatprep.subr.bf16.mxu0 %v649_v1 }
  0x13   : > { %604 = vmatpush3.bf16.msra.mxu1 %v630_v4 }
  0x15   : > { %612 = vmatpush3.bf16.msra.mxu0 %v632_v16 }
  0xd0   : > { %v343_v6 = vpop.f32.mrf.mxu0 }
  0xd1   : > { %v344_v8 = vadd.f32 %v571_v5, %v343_v6 }
  0xd2   : > { %v599_v7 = vpop.f32.mrf.mxu0 }
  0xd3   : > { %v350_v12 = vmax.f32 %v344_v8, 0.0 }
  0xd4   : > { %v346_v9 = vpop.f32.mrf.mxu0 }
  0xd5   : > { %v347_v10 = vadd.f32 %v571_v5, %v346_v9 }
  0xd6   : > { %v600_v11 = vpop.f32.mrf.mxu0 }
  0xd7   : > { %v351_v13 = vmax.f32 %v347_v10, 0.0 }
  0xd9   : > { %v352_v14 = vpack.c.bf16 %v351_v13, %v350_v12 }
  0xdb   : > { %606 = vmatmul.mubr.msk.bf16.vlgmr.msra.gmra.mxu1 %vm376_vm2, %v352_v14 }
 0x19b   : > { %v414_v18 = vpop.f32.mrf.mxu1 }
 0x19c   : > { %v415_v20 = vadd.f32 %v575_v17, %v414_v18 }
 0x19d   : > { %v607_v19 = vpop.f32.mrf.mxu1 }
 0x19e   : > { %v421_v24 = vmax.f32 %v415_v20, 0.0 }
 0x19f   : > { %v417_v21 = vpop.f32.mrf.mxu1 }
 0x1a0   : > { %v418_v22 = vadd.f32 %v575_v17, %v417_v21 }
 0x1a1   : > { %v608_v23 = vpop.f32.mrf.mxu1 }
 0x1a2   : > { %v422_v25 = vmax.f32 %v418_v22, 0.0 }
 0x1a4   : > { %v423_v26 = vpack.c.bf16 %v422_v25, %v421_v24 }
 0x1a6   : > { %614 = vmatmul.mubr.msk.bf16.vlgmr.msra.gmra.mxu0 %vm376_vm2, %v423_v26 }
 0x266   : > { %v484_v28 = vpop.f32.mrf.mxu0 }
 0x267   : > { %v485_v29 = vadd.f32 %v579_v27, %v484_v28 }
 0x268   : > { %v615_v30 = vpop.f32.mrf.mxu0 }
 0x269   : > { %v583_v31 = vmul.f32 -1.442695, %v485_v29 }
 0x26a   : > { %v487_v32 = vpop.f32.mrf.mxu0 }
 0x26b   : > { %633 = vpow2.f32 %v583_v31  ;;  %v488_v33 = vadd.f32 %v579_v27, %v487_v32 }
 0x26c   : > { %v616_v34 = vpop.f32.mrf.mxu0 }
 0x26d   : > { %v584_v35 = vmul.f32 -1.442695, %v488_v33 }
 0x26f   : > { %635 = vpow2.f32 %v584_v35 }
 0x278   : > { %v634_v36 = vpop.eup %633 }
 0x279   : > { %v497_v37 = vadd.f32 1.0, %v634_v36 }
 0x27b   : > { %637 = vrcp.f32 %v497_v37 }
 0x27c   : > { %v636_v38 = vpop.eup %635 }
 0x27d   : > { %v498_v39 = vadd.f32 1.0, %v636_v38 }
 0x27f   : > { %639 = vrcp.f32 %v498_v39 }
 0x288   : > { %v638_v40 = vpop.eup %637 }
 0x289   : > { %504 = vst.msk [vmem:[%s280_s29] sm:$0xff] %vm503_vm3, %v638_v40 }
 0x28c   : > { %v640_v41 = vpop.eup %639 }
 0x28d   : > { %505 = vst.msk [vmem:[%s280_s29 + $0x8] sm:$0xff] %vm503_vm3, %v640_v41 }
 0x28e PF: > { %s17_s24 = sadd.s32 1, %s647_s24  }
 0x28f   : > { %p14_p4 = scmp.ge.s32.totalorder %s17_s24, 6  }
 0x291   :  { %16 = sbr.rel (!%p14_p4) target bundleno = 1 (0x1), region = 78 }

</bundles_post_ra>
